<compile_context>
chip_gen: v7x
topology: tpu7x:2x2x1
jax: 0.10.0
libtpu: 0.0.40
codegen_flags: <defaults>
</compile_context>

<pallas_src>
import functools

import jax
import jax.numpy as jnp
from jax.experimental import pallas as pl
from jax.experimental.pallas import tpu as pltpu

LANES = 128
_MAX_BLOCK_ROWS = 2048  # (2048,128) f32 = 1 MiB per stream block


def _static_pow(x, gamma):
    """x ** gamma specialized at trace time (gamma is a static Python number)."""
    g = float(gamma)
    if g == 0.0:
        return jnp.ones_like(x)
    if g == 1.0:
        return x
    if g.is_integer() and 2.0 <= g <= 8.0:
        r = x
        for _ in range(int(g) - 1):
            r = r * x
        return r
    return x ** g


def _bfl_block_kernel(x_ref, t_ref,
                      pos_num_ref, pos_den_ref, neg_num_ref, neg_den_ref,
                      *, gamma, ignore_index, smooth, rows, block_rows,
                      mask_rows):
    x = x_ref[...].astype(jnp.float32)
    t = t_ref[...].astype(jnp.float32)

    if mask_rows:
        # Last grid block may be partial: rows past `rows` hold unspecified
        # data.  Sanitize them (NaN-safe) so they contribute exactly zero.
        i = pl.program_id(0)
        row_id = jax.lax.broadcasted_iota(jnp.int32, x.shape, 0) + i * block_rows
        valid = row_id < rows
        x = jnp.where(valid, x, 0.0)
        t = jnp.where(valid, t, 2.0)  # neither 0 nor 1 -> both masks are 0

    prob = jax.nn.sigmoid(x)
    prob = jnp.clip(prob, smooth, 1.0 - smooth)

    pos_mask = (t == 1.0).astype(jnp.float32)
    neg_mask = (t == 0.0).astype(jnp.float32)
    if ignore_index is not None:
        vmask = (t != float(ignore_index)).astype(jnp.float32)
        pos_mask = pos_mask * vmask
        neg_mask = neg_mask * vmask

    pos_w = pos_mask * _static_pow(1.0 - prob, gamma)
    neg_w = neg_mask * _static_pow(prob, gamma)

    log_p = jnp.log(prob)
    # log(sigmoid(-x)) == -softplus(x), numerically stable form
    # (matches F.logsigmoid(-output)).
    log_sig_neg = -(jnp.maximum(x, 0.0) + jnp.log(1.0 + jnp.exp(-jnp.abs(x))))

    # Per-block partial sums, reduced over the sublane axis -> (1, 128) each.
    pos_num_ref[...] = jnp.sum(pos_w * log_p, axis=0, keepdims=True)[None]
    pos_den_ref[...] = jnp.sum(pos_w, axis=0, keepdims=True)[None]
    neg_num_ref[...] = jnp.sum(neg_w * log_sig_neg, axis=0, keepdims=True)[None]
    neg_den_ref[...] = jnp.sum(neg_w, axis=0, keepdims=True)[None]


def binary_focal_loss(output, target, *, alpha=3, gamma=2, ignore_index=None,
                      smooth=1e-6, max_block_rows=_MAX_BLOCK_ROWS):
    """Pallas implementation of BinaryFocalLoss.forward(output, target)."""
    assert output.shape == target.shape
    if target.dtype == jnp.bool_:
        target = target.astype(jnp.float32)

    n = output.size
    n_pad = pl.cdiv(n, LANES) * LANES
    xf = output.reshape(-1)
    tf = target.reshape(-1)
    if n_pad != n:
        # Pad target with a sentinel (neither 0 nor 1) so the lane padding
        # contributes exactly zero to every sum -> no mask stream needed.
        xf = jnp.pad(xf, (0, n_pad - n))
        tf = jnp.pad(tf, (0, n_pad - n), constant_values=2)
    rows = n_pad // LANES
    x2 = xf.reshape(rows, LANES)
    t2 = tf.reshape(rows, LANES)

    if rows <= max_block_rows:
        block_rows = rows          # full-extent block, single grid step
        num_blocks = 1
        mask_rows = False
    else:
        block_rows = max_block_rows
        num_blocks = pl.cdiv(rows, block_rows)
        mask_rows = (rows % block_rows) != 0

    kernel = functools.partial(
        _bfl_block_kernel, gamma=gamma, ignore_index=ignore_index,
        smooth=smooth, rows=rows, block_rows=block_rows, mask_rows=mask_rows)

    part_shape = jax.ShapeDtypeStruct((num_blocks, 1, LANES), jnp.float32)
    part_spec = pl.BlockSpec((1, 1, LANES), lambda i: (i, 0, 0))
    in_spec = pl.BlockSpec((block_rows, LANES), lambda i: (i, 0))

    pos_num, pos_den, neg_num, neg_den = pl.pallas_call(
        kernel,
        out_shape=(part_shape, part_shape, part_shape, part_shape),
        grid_spec=pltpu.PrefetchScalarGridSpec(
            num_scalar_prefetch=0,
            grid=(num_blocks,),
            in_specs=[in_spec, in_spec],
            out_specs=[part_spec, part_spec, part_spec, part_spec],
        ),
        compiler_params=pltpu.CompilerParams(
            dimension_semantics=("parallel",)),
    )(x2, t2)

    # Final scalar combine (tiny) stays in plain JAX.
    pos_loss = -jnp.sum(pos_num) / (jnp.sum(pos_den) + 1e-4)
    neg_loss = -float(alpha) * jnp.sum(neg_num) / (jnp.sum(neg_den) + 1e-4)
    return pos_loss + neg_loss


def _binary_focal_loss_ref(output, target, *, alpha=3, gamma=2,
                           ignore_index=None, smooth=1e-6):
    """Pure-JAX reference mirroring the PyTorch module's forward."""
    x = output.astype(jnp.float32)
    t = target.astype(jnp.float32)
    prob = jnp.clip(jax.nn.sigmoid(x), smooth, 1.0 - smooth)
    pos_mask = (t == 1).astype(jnp.float32)
    neg_mask = (t == 0).astype(jnp.float32)
    if ignore_index is not None:
        vmask = (t != ignore_index).astype(jnp.float32)
        pos_mask = pos_mask * vmask
        neg_mask = neg_mask * vmask
    pos_weight = pos_mask * (1.0 - prob) ** gamma
    pos_loss = -jnp.sum(pos_weight * jnp.log(prob)) / (jnp.sum(pos_weight) + 1e-4)
    neg_weight = neg_mask * prob ** gamma
    neg_loss = (-alpha * jnp.sum(neg_weight * jax.nn.log_sigmoid(-x))
                / (jnp.sum(neg_weight) + 1e-4))
    return pos_loss + neg_loss


if __name__ == "__main__":
    key = jax.random.PRNGKey(0)
    k1, k2, k3, k4, k5, k6 = jax.random.split(key, 6)

    # 1) NCHW logits + binary target (C == 1), module defaults alpha=3, gamma=2.
    x = jax.random.normal(k1, (2, 1, 16, 16), dtype=jnp.float32) * 2.0
    t = (jax.random.uniform(k2, (2, 1, 16, 16)) > 0.5).astype(jnp.float32)
    out = jax.block_until_ready(binary_focal_loss(x, t))
    ref = _binary_focal_loss_ref(x, t)
    assert jnp.allclose(out, ref, rtol=1e-5, atol=1e-5), (out, ref)

    # 2) gamma=0 path (pow specialization dropped entirely).
    out0 = jax.block_until_ready(binary_focal_loss(x, t, gamma=0))
    ref0 = _binary_focal_loss_ref(x, t, gamma=0)
    assert jnp.allclose(out0, ref0, rtol=1e-5, atol=1e-5), (out0, ref0)

    # 3) multi-block + partial last block + ignore_index + integer gamma=3
    #    (tiny block cap only to exercise the tiled/masked path at small size).
    x3 = jax.random.normal(k3, (2, 1, 20, 32), dtype=jnp.float32)
    t3 = jnp.floor(jax.random.uniform(k4, (2, 1, 20, 32)) * 3.0)  # {0,1,2}
    out3 = jax.block_until_ready(
        binary_focal_loss(x3, t3, gamma=3, ignore_index=2, max_block_rows=8))
    ref3 = _binary_focal_loss_ref(x3, t3, gamma=3, ignore_index=2)
    assert jnp.allclose(out3, ref3, rtol=1e-5, atol=1e-5), (out3, ref3)

    # 4) ragged n (not a multiple of 128) + non-integer gamma + bf16 inputs.
    x4 = jax.random.normal(k5, (2, 1, 15, 17), dtype=jnp.bfloat16)
    t4 = (jax.random.uniform(k6, (2, 1, 15, 17)) > 0.5).astype(jnp.bfloat16)
    out4 = jax.block_until_ready(binary_focal_loss(x4, t4, gamma=2.5))
    ref4 = _binary_focal_loss_ref(x4, t4, gamma=2.5)
    assert jnp.allclose(out4, ref4, rtol=1e-5, atol=1e-5), (out4, ref4)

    print("KERNEL_OK")
</pallas_src>

<mosaic_0001>
module attributes {stable_mosaic.version = 11 : i64} {
  func.func @_bfl_block_kernel(%arg0: i32, %arg1: memref<4x128xf32, #tpu.memory_space<vmem>>, %arg2: memref<4x128xf32, #tpu.memory_space<vmem>>, %arg3: memref<1x1x128xf32, #tpu.memory_space<vmem>>, %arg4: memref<1x1x128xf32, #tpu.memory_space<vmem>>, %arg5: memref<1x1x128xf32, #tpu.memory_space<vmem>>, %arg6: memref<1x1x128xf32, #tpu.memory_space<vmem>>) attributes {dimension_semantics = [#tpu.dimension_semantics<parallel>], iteration_bounds = array<i64: 1>, scalar_prefetch = 0 : i64, scratch_operands = 0 : i64, tpu.core_type = #tpu.core_type<tc>, window_params = [{transform_indices = @transform_0, window_bounds = array<i64: 4, 128>}, {transform_indices = @transform_1, window_bounds = array<i64: 4, 128>}, {transform_indices = @transform_2, window_bounds = array<i64: 1, 1, 128>}, {transform_indices = @transform_3, window_bounds = array<i64: 1, 1, 128>}, {transform_indices = @transform_4, window_bounds = array<i64: 1, 1, 128>}, {transform_indices = @transform_5, window_bounds = array<i64: 1, 1, 128>}]} {
    %c0 = arith.constant 0 : index
    %c0_0 = arith.constant 0 : index
    %0 = vector.load %arg1[%c0, %c0_0] : memref<4x128xf32, #tpu.memory_space<vmem>>, vector<4x128xf32>
    %c0_1 = arith.constant 0 : index
    %c0_2 = arith.constant 0 : index
    %1 = vector.load %arg2[%c0_1, %c0_2] : memref<4x128xf32, #tpu.memory_space<vmem>>, vector<4x128xf32>
    %2 = arith.negf %0 : vector<4x128xf32>
    %3 = math.exp %2 : vector<4x128xf32>
    %cst = arith.constant 1.000000e+00 : f32
    %4 = vector.broadcast %cst : f32 to vector<4x128xf32>
    %5 = arith.addf %4, %3 : vector<4x128xf32>
    %6 = arith.divf %4, %5 : vector<4x128xf32>
    %cst_3 = arith.constant 9.99999997E-7 : f32
    %cst_4 = arith.constant 0.999998986 : f32
    %7 = vector.broadcast %cst_3 : f32 to vector<4x128xf32>
    %8 = arith.maximumf %7, %6 : vector<4x128xf32>
    %9 = vector.broadcast %cst_4 : f32 to vector<4x128xf32>
    %10 = arith.minimumf %9, %8 : vector<4x128xf32>
    %cst_5 = arith.constant 1.000000e+00 : f32
    %11 = vector.broadcast %cst_5 : f32 to vector<4x128xf32>
    %12 = arith.cmpf oeq, %1, %11 : vector<4x128xf32>
    %13 = arith.extui %12 : vector<4x128xi1> to vector<4x128xi32>
    %14 = arith.sitofp %13 : vector<4x128xi32> to vector<4x128xf32>
    %cst_6 = arith.constant 0.000000e+00 : f32
    %15 = vector.broadcast %cst_6 : f32 to vector<4x128xf32>
    %16 = arith.cmpf oeq, %1, %15 : vector<4x128xf32>
    %17 = arith.extui %16 : vector<4x128xi1> to vector<4x128xi32>
    %18 = arith.sitofp %17 : vector<4x128xi32> to vector<4x128xf32>
    %cst_7 = arith.constant 1.000000e+00 : f32
    %19 = vector.broadcast %cst_7 : f32 to vector<4x128xf32>
    %20 = arith.subf %19, %10 : vector<4x128xf32>
    %21 = arith.mulf %20, %20 : vector<4x128xf32>
    %22 = arith.mulf %14, %21 : vector<4x128xf32>
    %23 = arith.mulf %10, %10 : vector<4x128xf32>
    %24 = arith.mulf %18, %23 : vector<4x128xf32>
    %25 = math.log %10 : vector<4x128xf32>
    %cst_8 = arith.constant 0.000000e+00 : f32
    %26 = vector.broadcast %cst_8 : f32 to vector<4x128xf32>
    %27 = arith.maximumf %0, %26 : vector<4x128xf32>
    %28 = math.absf %0 : vector<4x128xf32>
    %cst_9 = arith.constant 0.000000e+00 : f32
    %29 = vector.broadcast %cst_9 : f32 to vector<4x128xf32>
    %30 = arith.subf %29, %28 : vector<4x128xf32>
    %31 = math.exp %30 : vector<4x128xf32>
    %cst_10 = arith.constant 1.000000e+00 : f32
    %32 = vector.broadcast %cst_10 : f32 to vector<4x128xf32>
    %33 = arith.addf %32, %31 : vector<4x128xf32>
    %34 = math.log %33 : vector<4x128xf32>
    %35 = arith.addf %27, %34 : vector<4x128xf32>
    %cst_11 = arith.constant 0.000000e+00 : f32
    %36 = vector.broadcast %cst_11 : f32 to vector<4x128xf32>
    %37 = arith.subf %36, %35 : vector<4x128xf32>
    %38 = arith.mulf %22, %25 : vector<4x128xf32>
    %cst_12 = arith.constant dense<0.000000e+00> : vector<128xf32>
    %39 = vector.multi_reduction <add>, %38, %cst_12 [0] : vector<4x128xf32> to vector<128xf32>
    %40 = vector.shape_cast %39 : vector<128xf32> to vector<1x128xf32>
    %41 = vector.shape_cast %40 : vector<1x128xf32> to vector<1x1x128xf32>
    %c0_13 = arith.constant 0 : index
    %c0_14 = arith.constant 0 : index
    %c0_15 = arith.constant 0 : index
    %42 = vector.load %arg3[%c0_13, %c0_14, %c0_15] : memref<1x1x128xf32, #tpu.memory_space<vmem>>, vector<1x1x128xf32>
    tpu.vector_store %arg3[%c0_13, %c0_14, %c0_15], %41 {strides = array<i32>} : memref<1x1x128xf32, #tpu.memory_space<vmem>>, vector<1x1x128xf32>,
    %cst_16 = arith.constant dense<0.000000e+00> : vector<128xf32>
    %43 = vector.multi_reduction <add>, %22, %cst_16 [0] : vector<4x128xf32> to vector<128xf32>
    %44 = vector.shape_cast %43 : vector<128xf32> to vector<1x128xf32>
    %45 = vector.shape_cast %44 : vector<1x128xf32> to vector<1x1x128xf32>
    %c0_17 = arith.constant 0 : index
    %c0_18 = arith.constant 0 : index
    %c0_19 = arith.constant 0 : index
    %46 = vector.load %arg4[%c0_17, %c0_18, %c0_19] : memref<1x1x128xf32, #tpu.memory_space<vmem>>, vector<1x1x128xf32>
    tpu.vector_store %arg4[%c0_17, %c0_18, %c0_19], %45 {strides = array<i32>} : memref<1x1x128xf32, #tpu.memory_space<vmem>>, vector<1x1x128xf32>,
    %47 = arith.mulf %24, %37 : vector<4x128xf32>
    %cst_20 = arith.constant dense<0.000000e+00> : vector<128xf32>
    %48 = vector.multi_reduction <add>, %47, %cst_20 [0] : vector<4x128xf32> to vector<128xf32>
    %49 = vector.shape_cast %48 : vector<128xf32> to vector<1x128xf32>
    %50 = vector.shape_cast %49 : vector<1x128xf32> to vector<1x1x128xf32>
    %c0_21 = arith.constant 0 : index
    %c0_22 = arith.constant 0 : index
    %c0_23 = arith.constant 0 : index
    %51 = vector.load %arg5[%c0_21, %c0_22, %c0_23] : memref<1x1x128xf32, #tpu.memory_space<vmem>>, vector<1x1x128xf32>
    tpu.vector_store %arg5[%c0_21, %c0_22, %c0_23], %50 {strides = array<i32>} : memref<1x1x128xf32, #tpu.memory_space<vmem>>, vector<1x1x128xf32>,
    %cst_24 = arith.constant dense<0.000000e+00> : vector<128xf32>
    %52 = vector.multi_reduction <add>, %24, %cst_24 [0] : vector<4x128xf32> to vector<128xf32>
    %53 = vector.shape_cast %52 : vector<128xf32> to vector<1x128xf32>
    %54 = vector.shape_cast %53 : vector<1x128xf32> to vector<1x1x128xf32>
    %c0_25 = arith.constant 0 : index
    %c0_26 = arith.constant 0 : index
    %c0_27 = arith.constant 0 : index
    %55 = vector.load %arg6[%c0_25, %c0_26, %c0_27] : memref<1x1x128xf32, #tpu.memory_space<vmem>>, vector<1x1x128xf32>
    tpu.vector_store %arg6[%c0_25, %c0_26, %c0_27], %54 {strides = array<i32>} : memref<1x1x128xf32, #tpu.memory_space<vmem>>, vector<1x1x128xf32>,
    return
  }
  func.func @transform_0(%arg0: i32) -> (i32, i32) {
    %c0_i32 = arith.constant 0 : i32
    %c0_i32_0 = arith.constant 0 : i32
    return %arg0, %c0_i32 : i32, i32
  }
  func.func @transform_1(%arg0: i32) -> (i32, i32) {
    %c0_i32 = arith.constant 0 : i32
    %c0_i32_0 = arith.constant 0 : i32
    return %arg0, %c0_i32 : i32, i32
  }
  func.func @transform_2(%arg0: i32) -> (i32, i32, i32) {
    %c0_i32 = arith.constant 0 : i32
    %c0_i32_0 = arith.constant 0 : i32
    %c0_i32_1 = arith.constant 0 : i32
    return %arg0, %c0_i32, %c0_i32_0 : i32, i32, i32
  }
  func.func @transform_3(%arg0: i32) -> (i32, i32, i32) {
    %c0_i32 = arith.constant 0 : i32
    %c0_i32_0 = arith.constant 0 : i32
    %c0_i32_1 = arith.constant 0 : i32
    return %arg0, %c0_i32, %c0_i32_0 : i32, i32, i32
  }
  func.func @transform_4(%arg0: i32) -> (i32, i32, i32) {
    %c0_i32 = arith.constant 0 : i32
    %c0_i32_0 = arith.constant 0 : i32
    %c0_i32_1 = arith.constant 0 : i32
    return %arg0, %c0_i32, %c0_i32_0 : i32, i32, i32
  }
  func.func @transform_5(%arg0: i32) -> (i32, i32, i32) {
    %c0_i32 = arith.constant 0 : i32
    %c0_i32_0 = arith.constant 0 : i32
    %c0_i32_1 = arith.constant 0 : i32
    return %arg0, %c0_i32, %c0_i32_0 : i32, i32, i32
  }
}

</mosaic_0001>

<bundles_post_ra>
// kernel: tpu_custom_call.1
= control target key start
LH: loop header
LB: loop body
LE: loop exit
PB: predicated region body
PF: predicated region fallthrough
CT: control target
= control target key end

     0   :  { %11 = vsyncpa [#allocation3], 0  ;;  %s458_s0 = inlined_call_operand.hbm [shape: f32[4,128], index: 0, kind: input, shape index: {}]   ;;  %s459_s1 = inlined_call_operand.hbm [shape: f32[4,128], index: 1, kind: input, shape index: {}]   ;;  %s460_s2 = inlined_call_operand.hbm [shape: f32[1,1,128], index: 2, kind: output, shape index: {0}]   ;;  %s461_s3 = inlined_call_operand.hbm [shape: f32[1,1,128], index: 3, kind: output, shape index: {1}]   ;;  %s462_s4 = inlined_call_operand.hbm [shape: f32[1,1,128], index: 4, kind: output, shape index: {2}]   ;;  %s463_s5 = inlined_call_operand.hbm [shape: f32[1,1,128], index: 5, kind: output, shape index: {3}]  }
   0x1   :  { %12 = vsyncpa [#allocation6], 0 }
   0x2   :  { %13 = vsyncpa [#allocation4], 0 }
   0x3   :  { %14 = vsyncpa [#allocation9], 0 }
   0x4   :  { %15 = vsyncpa [#allocation12], 0  ;;  %s329_s18 = smov [#allocation2]   ;;  %s330_s20 = smov [#allocation5]  }
   0x5   :  { %s22_s19 = sshll.u32 %s329_s18, 4  ;;  %s32_s21 = sshll.u32 %s330_s20, 4  ;;  %s23_s19 = int_to_ptr.vmem [resolvable:$true] %s22_s19  ;;  %s33_s21 = int_to_ptr.vmem [resolvable:$true] %s32_s21 }
   0x6   :  { %s187_s24 = scalar_lea.hbm %s458_s0, 64 }
   0x7   :  { %p188_p0 = scmp.ne.s32.totalorder %s458_s0, %s187_s24  ;;  %p191_p1 = scmp.lt.u32.totalorder %s187_s24, %s458_s0 }
   0x9   :  { %p193_p2 = pnand %p191_p1, %p188_p0 }
   0xb   :  { %196 = shalt.err (!%p193_p2)
}
   0xc   :  { %s197_s29 = scalar_lea.vmem %s23_s19, 64  ;;  %p202_p4 = scmp.lt.s32.totalorder %s23_s19, %s23_s19 }
   0xd   :  { %p198_p3 = scmp.ne.s32.totalorder %s23_s19, %s197_s29  ;;  %p203_p5 = scmp.lt.s32.totalorder %s197_s29, %s197_s29 }
   0xf   :  { %p204_p6 = por %p203_p5, %p202_p4 }
  0x11   :  { %p205_p7 = pnand %p204_p6, %p198_p3 }
  0x13   :  { %208 = shalt.err (!%p205_p7)
}
  0x14   :  { %25 = dma.hbm_to_vmem [thread:$0]  %s458_s0, 64, %s23_s19, [#allocation3]  }
  0x15   :  { %s209_s9 = scalar_lea.hbm %s459_s1, 64 }
  0x16   :  { %p210_p8 = scmp.ne.s32.totalorder %s459_s1, %s209_s9  ;;  %p213_p9 = scmp.lt.u32.totalorder %s209_s9, %s459_s1 }
  0x18   :  { %p215_p10 = pnand %p213_p9, %p210_p8 }
  0x1a   :  { %218 = shalt.err (!%p215_p10)
}
  0x1b   :  { %s219_s14 = scalar_lea.vmem %s33_s21, 64  ;;  %p224_p12 = scmp.lt.s32.totalorder %s33_s21, %s33_s21 }
  0x1c   :  { %p220_p11 = scmp.ne.s32.totalorder %s33_s21, %s219_s14  ;;  %p225_p13 = scmp.lt.s32.totalorder %s219_s14, %s219_s14 }
  0x1e   :  { %p226_p0 = por %p225_p13, %p224_p12 }
  0x20   :  { %p227_p1 = pnand %p226_p0, %p220_p11 }
  0x22   :  { %230 = shalt.err (!%p227_p1)
}
  0x23   :  { %35 = dma.hbm_to_vmem [thread:$0]  %s459_s1, 64, %s33_s21, [#allocation6]  }
  0x24   :  { %319 = dma.done.wait [#allocation3], 64  }
  0x25   :  { %320 = vsyncadd [#allocation3], 4294967232 }
  0x26   :  { %321 = dma.done.wait [#allocation6], 64  }
  0x27   :  { %322 = vsyncadd [#allocation6], 4294967232  ;;  %v42_v0 = vld [vmem:[#allocation2] sm:$0xf]  ;;  %v43_v9 = vld [vmem:[#allocation5] sm:$0xf] }
  0x28   :  { %v167_v1 = vmul.f32 -1.442695, %v42_v0  ;;  %v66_v2 = vand.u32 2147483647, %v42_v0  ;;  %vm55_vm0 = vcmp.eq.f32.partialorder %v43_v9, 0.0  ;;  %vm52_vm1 = vcmp.eq.f32.partialorder %v43_v9, 1.0 }
  0x29   :  { %v331_v13 = vmov 0.0   ;;  %v65_v15 = vmax.f32 %v42_v0, 0.0  ;;  %vm76_vm2 = vcmask 1043456   ;;  %s332_s1 = smov [#allocation11]   ;;  %s333_s17 = smov [#allocation8]  }
  0x2a   :  { %177 = vpow2.f32 %v167_v1  ;;  %v67_v3 = vsub.f32 0.0, %v66_v2  ;;  %v169_v14 = vsel %vm55_vm0, 1.0, %v331_v13  ;;  %v168_v19 = vsel %vm52_vm1, 1.0, %v331_v13  ;;  %s146_s16 = sshll.u32 %s332_s1, 4  ;;  %s126_s18 = sshll.u32 %s333_s17, 4  ;;  %s147_s16 = int_to_ptr.vmem [resolvable:$true] %s146_s16  ;;  %s394_s18 = int_to_ptr.vmem [resolvable:$true] %s126_s18 }
  0x2b   :  { %s334_s19 = smov [#allocation10]   ;;  %s231_s21 = scalar_lea.vmem %s147_s16, 16 }
  0x2c   :  { %v68_v4 = vmul.f32 1.442695, %v67_v3  ;;  %s136_s20 = sshll.u32 %s334_s19, 4  ;;  %p232_p2 = scmp.ne.s32.totalorder %s147_s16, %s231_s21  ;;  %s408_s20 = int_to_ptr.vmem [resolvable:$true] %s136_s20 }
  0x2d   :  { %s235_s22 = scalar_lea.vmem %s147_s16, 32  ;;  %p236_p3 = scmp.lt.s32.totalorder %s147_s16, %s147_s16 }
  0x2e   :  { %179 = vpow2.f32 %v68_v4  ;;  %p237_p4 = scmp.lt.s32.totalorder %s235_s22, %s231_s21 }
  0x30   :  { %p238_p5 = por %p237_p4, %p236_p3 }
  0x32   :  { %p239_p6 = pnand %p238_p5, %p232_p2 }
  0x34   :  { %v178_v5 = vpop.eup %177 }
  0x35   :  { %v47_v6 = vadd.f32 1.0, %v178_v5 }
  0x37   :  { %181 = vrcp.f32 %v47_v6 }
  0x38   :  { %v180_v7 = vpop.eup %179 }
  0x39   :  { %v70_v8 = vadd.f32 1.0, %v180_v7 }
  0x3b   :  { %183 = vlog2.f32 %v70_v8 }
  0x41   :  { %v182_v10 = vpop.eup %181 }
  0x42   :  { %v50_v11 = vmax.f32 %v182_v10, 1e-06 }
  0x44   :  { %v51_v12 = vmin.f32 %v50_v11, 0.999999 }
  0x45   :  { %v184_v16 = vpop.eup %183 }
  0x46   :  { %v58_v17 = vsub.f32 1.0, %v51_v12  ;;  %185 = vlog2.f32 %v51_v12  ;;  %v61_v18 = vmul.f32 %v51_v12, %v51_v12  ;;  %v72_v20 = vmul.f32 0.6931472, %v184_v16 }
  0x48   :  { %v59_v21 = vmul.f32 %v58_v17, %v58_v17  ;;  %v62_v22 = vmul.f32 %v169_v14, %v61_v18  ;;  %v73_v23 = vadd.f32 %v72_v20, %v65_v15 }
  0x4a   :  { %v60_v24 = vmul.f32 %v168_v19, %v59_v21  ;;  %v102_v25 = vsel %vm76_vm2, %v62_v22, 0.0  ;;  %v74_v26 = vsub.f32 0.0, %v73_v23 }
  0x4b   :  { %v103_v27 = vrot.slane %v102_v25, 4 }
  0x4c   :  { %v85_v28 = vsel %vm76_vm2, %v60_v24, 0.0  ;;  %v93_v30 = vmul.f32 %v74_v26, %v62_v22 }
  0x4d   :  { %v86_v29 = vrot.slane %v85_v28, 4  ;;  %v104_v31 = vadd.f32 %v103_v27, %v102_v25 }
  0x4e   :  { %v94_v33 = vsel %vm76_vm2, %v93_v30, 0.0 }
  0x4f   :  { %v87_v32 = vadd.f32 %v86_v29, %v85_v28  ;;  %v105_v34 = vrot.slane %v104_v31, 2  ;;  %v95_v36 = vrot.slane %v94_v33, 4 }
  0x50   :  { %v186_v35 = vpop.eup %185 }
  0x51   :  { %v88_v37 = vrot.slane %v87_v32, 2  ;;  %v64_v38 = vmul.f32 0.6931472, %v186_v35  ;;  %v106_v39 = vadd.f32 %v105_v34, %v104_v31  ;;  %v96_v40 = vadd.f32 %v95_v36, %v94_v33 }
  0x53   :  { %v89_v41 = vadd.f32 %v88_v37, %v87_v32  ;;  %v75_v42 = vmul.f32 %v64_v38, %v60_v24  ;;  %v107_v43 = vrot.slane %v106_v39, 1  ;;  %v97_v44 = vrot.slane %v96_v40, 2 }
  0x55   :  { %v90_v45 = vrot.slane %v89_v41, 1  ;;  %v77_v46 = vsel %vm76_vm2, %v75_v42, 0.0  ;;  %v108_v47 = vadd.f32 %v107_v43, %v106_v39  ;;  %v98_v49 = vadd.f32 %v97_v44, %v96_v40 }
  0x56   :  { %v78_v48 = vrot.slane %v77_v46, 4 }
  0x57   :  { %v91_v50 = vadd.f32 %v90_v45, %v89_v41  ;;  %109 = vst [vmem:[#allocation11] sm:$0x1] %v108_v47  ;;  %v99_v52 = vrot.slane %v98_v49, 1 }
  0x58   :  { %v79_v51 = vadd.f32 %v78_v48, %v77_v46 }
  0x59   :  { %242 = shalt.err (!%p239_p6)
}
  0x5a   :  { %s243_s25 = scalar_lea.hbm %s463_s5, 16 }
  0x5b   :  { %p244_p7 = scmp.ne.s32.totalorder %s463_s5, %s243_s25  ;;  %p247_p8 = scmp.lt.u32.totalorder %s243_s25, %s463_s5 }
  0x5d   :  { %p249_p9 = pnand %p247_p8, %p244_p7 }
  0x5f   :  { %252 = shalt.err (!%p249_p9)
}
  0x60   :  { %149 = dma.vmem_to_hbm [thread:$0]  %s147_s16, 16, %s463_s5, [#allocation12]   ;;  %92 = vst [vmem:[#allocation8] sm:$0x1] %v91_v50  ;;  %v80_v53 = vrot.slane %v79_v51, 2  ;;  %v100_v54 = vadd.f32 %v99_v52, %v98_v49 }
  0x61   :  { %s253_s7 = scalar_lea.vmem %s394_s18, 16  ;;  %s257_s8 = scalar_lea.vmem %s394_s18, 32 }
  0x62   :  { %p254_p10 = scmp.ne.s32.totalorder %s394_s18, %s253_s7  ;;  %p258_p11 = scmp.lt.s32.totalorder %s394_s18, %s394_s18 }
  0x63   :  { %p259_p12 = scmp.lt.s32.totalorder %s257_s8, %s253_s7 }
  0x65   :  { %p260_p13 = por %p259_p12, %p258_p11 }
  0x67   :  { %p261_p0 = pnand %p260_p13, %p254_p10 }
  0x69   :  { %264 = shalt.err (!%p261_p0)
}
  0x6a   :  { %s265_s11 = scalar_lea.hbm %s461_s3, 16 }
  0x6b   :  { %p266_p1 = scmp.ne.s32.totalorder %s461_s3, %s265_s11  ;;  %p269_p2 = scmp.lt.u32.totalorder %s265_s11, %s461_s3 }
  0x6d   :  { %p271_p3 = pnand %p269_p2, %p266_p1 }
  0x6f   :  { %274 = shalt.err (!%p271_p3)
}
  0x70   :  { %129 = dma.vmem_to_hbm [thread:$0]  %s394_s18, 16, %s461_s3, [#allocation9]   ;;  %v81_v55 = vadd.f32 %v80_v53, %v79_v51  ;;  %101 = vst [vmem:[#allocation10] sm:$0x1] %v100_v54 }
  0x71   :  { %s335_s1 = smov [#allocation7]   ;;  %s275_s17 = scalar_lea.vmem %s408_s20, 16 }
  0x72   :  { %s116_s16 = sshll.u32 %s335_s1, 4  ;;  %p276_p4 = scmp.ne.s32.totalorder %s408_s20, %s275_s17  ;;  %s117_s16 = int_to_ptr.vmem [resolvable:$true] %s116_s16 }
  0x73   :  { %s279_s19 = scalar_lea.vmem %s408_s20, 32  ;;  %p280_p5 = scmp.lt.s32.totalorder %s408_s20, %s408_s20 }
  0x74   :  { %p281_p6 = scmp.lt.s32.totalorder %s279_s19, %s275_s17 }
  0x76   :  { %p282_p7 = por %p281_p6, %p280_p5 }
  0x78   :  { %p283_p8 = pnand %p282_p7, %p276_p4 }
  0x7a   :  { %286 = shalt.err (!%p283_p8)
}
  0x7b   :  { %s287_s23 = scalar_lea.hbm %s462_s4, 16 }
  0x7c   :  { %p288_p9 = scmp.ne.s32.totalorder %s462_s4, %s287_s23  ;;  %p291_p10 = scmp.lt.u32.totalorder %s287_s23, %s462_s4 }
  0x7e   :  { %p293_p11 = pnand %p291_p10, %p288_p9 }
  0x80   :  { %296 = shalt.err (!%p293_p11)
}
  0x81   :  { %139 = dma.vmem_to_hbm [thread:$0]  %s408_s20, 16, %s462_s4, [#allocation9]   ;;  %v82_v56 = vrot.slane %v81_v55, 1 }
  0x82   :  { %s297_s28 = scalar_lea.vmem %s117_s16, 16  ;;  %s301_s29 = scalar_lea.vmem %s117_s16, 32 }
  0x83   :  { %v83_v57 = vadd.f32 %v82_v56, %v81_v55  ;;  %p298_p12 = scmp.ne.s32.totalorder %s117_s16, %s297_s28  ;;  %p302_p13 = scmp.lt.s32.totalorder %s117_s16, %s117_s16 }
  0x84   :  { %p303_p0 = scmp.lt.s32.totalorder %s301_s29, %s297_s28 }
  0x85   :  { %84 = vst [vmem:[#allocation7] sm:$0x1] %v83_v57 }
  0x86   :  { %p304_p1 = por %p303_p0, %p302_p13 }
  0x88   :  { %p305_p2 = pnand %p304_p1, %p298_p12 }
  0x8a   :  { %308 = shalt.err (!%p305_p2)
}
  0x8b   :  { %s309_s7 = scalar_lea.hbm %s460_s2, 16 }
  0x8c   :  { %p310_p3 = scmp.ne.s32.totalorder %s460_s2, %s309_s7  ;;  %p313_p4 = scmp.lt.u32.totalorder %s309_s7, %s460_s2 }
  0x8e   :  { %p315_p5 = pnand %p313_p4, %p310_p3 }
  0x90   :  { %318 = shalt.err (!%p315_p5)
}
  0x91   :  { %119 = dma.vmem_to_hbm [thread:$0]  %s117_s16, 16, %s460_s2, [#allocation4]  }
  0x92   :  { %323 = dma.done.wait [#allocation4], 16  }
  0x93   :  { %324 = vsyncadd [#allocation4], 4294967280 }
  0x94   :  { %325 = dma.done.wait [#allocation9], 32  }
  0x95   :  { %326 = vsyncadd [#allocation9], 4294967264 }
  0x96   :  { %327 = dma.done.wait [#allocation12], 16  }
  0x97   :  { %328 = vsyncadd [#allocation12], 4294967280 }
  0x98   :  { %162 = vsyncpa [#allocation3], 1 }
  0x99   :  { %163 = vsyncpa [#allocation6], 1 }
  0x9a   :  { %164 = vsyncpa [#allocation4], 1 }
  0x9b   :  { %165 = vsyncpa [#allocation9], 1 }
  0x9c   :  { %166 = vsyncpa [#allocation12], 1 }

</bundles_post_ra>
